<compile_context>
chip_gen: v7x
topology: tpu7x:2x2x1
jax: 0.10.0
libtpu: 0.0.40
codegen_flags: <defaults>
</compile_context>

<pallas_src>
from functools import partial

import jax
import jax.numpy as jnp
from jax.experimental import pallas as pl
from jax.experimental.pallas import tpu as pltpu


def rawnet_kernel(x_ref, w1_ref, b1_ref, w2_ref, b2_ref, w3t_ref, b3_ref,
                  out_ref, *, bf16_matmul):
    # x_ref : (2, TILE)    batch on lanes
    # w1    : (H, 2)  b1: (H, 1)
    # w2    : (H, H)  b2: (H, 1)
    # w3t   : (H, 1)  b3: (1, 1)
    x0 = x_ref[0:1, :]                                   # (1, TILE)
    x1 = x_ref[1:2, :]                                   # (1, TILE)

    # lin1 + tanh: contraction K=2 -> two broadcast FMAs on the VPU (MXU stays free).
    h1 = w1_ref[:, 0:1] * x0 + w1_ref[:, 1:2] * x1 + b1_ref[...]   # (H, TILE)
    h1 = jnp.tanh(h1)

    # lin2 + tanh: the only real matmul, on the MXU (optionally bf16 inputs,
    # f32 accumulation; default f32 to keep the 1e-5 contract & v5e path).
    if bf16_matmul:
        h2 = jnp.dot(w2_ref[...].astype(jnp.bfloat16), h1.astype(jnp.bfloat16),
                     preferred_element_type=jnp.float32) + b2_ref[...]
    else:
        h2 = jnp.dot(w2_ref[...], h1,
                     preferred_element_type=jnp.float32) + b2_ref[...]
    h2 = jnp.tanh(h2)                                    # (H, TILE)

    # lin3 + sigmoid: single output row -> VPU multiply + sublane (XLU) reduce.
    # sigmoid(z) == 0.5*tanh(0.5*z) + 0.5 exactly -> guaranteed single EUP push.
    z = jnp.sum(w3t_ref[...] * h2, axis=0, keepdims=True) + b3_ref[...]  # (1, TILE)
    out_ref[...] = (0.5 * jnp.tanh(0.5 * z) + 0.5).astype(out_ref.dtype)


def _round_up(a, b):
    return ((a + b - 1) // b) * b


@partial(jax.jit, static_argnames=("tile_n", "bf16_matmul"))
def rawnet_forward(x, params, tile_n=8192, bf16_matmul=False):
    """x: (N, 2) float32.  params in PyTorch layout (weight=(out,in), bias=(out,)).
    Returns (N, 1) float32, matching RawNet.forward.

    The pad/transpose/slice layout plumbing is fused with the pallas_call under
    this single jit (no separate full-HBM wrapper passes / dispatches)."""
    n = x.shape[0]
    h = params["w1"].shape[0]

    # ---- tile selection -------------------------------------------------
    # Big tiles amortize the ~0.35 us/step pipeline overhead; but if the whole
    # batch would fit one tile, split it so the grid has >= 2 steps and the
    # "parallel" axis can be sharded across v7x's two TensorCores.
    n128 = _round_up(n, 128)
    tile = min(tile_n, n128)
    if tile == n128 and n128 >= 256:
        tile = _round_up((n128 + 1) // 2, 128)
    n_pad = _round_up(n, tile)
    grid = (n_pad // tile,)

    # ---- layout plumbing: batch -> lane axis, pad to a whole number of tiles
    xt = jnp.pad(x.astype(jnp.float32).T, ((0, 0), (0, n_pad - n)))  # (2, n_pad)

    w1 = params["w1"].astype(jnp.float32)                 # (H, 2)
    b1 = params["b1"].astype(jnp.float32).reshape(h, 1)   # (H, 1)
    w2 = params["w2"].astype(jnp.float32)                 # (H, H)
    b2 = params["b2"].astype(jnp.float32).reshape(h, 1)   # (H, 1)
    w3t = params["w3"].astype(jnp.float32).T              # (H, 1)
    b3 = params["b3"].astype(jnp.float32).reshape(1, 1)   # (1, 1)

    def const(shape):
        # weights/biases: same (only) block every grid step -> stay VMEM-resident
        return pl.BlockSpec(shape, lambda i: tuple(0 for _ in shape))

    # Advisory cost so XLA schedules/overlaps this tiny custom call sensibly.
    cost = pl.CostEstimate(
        flops=n_pad * (2 * h * h + 6 * h + 2),
        transcendentals=n_pad * (2 * h + 1),
        bytes_accessed=n_pad * 12 + 4 * (2 * h + h + h * h + h + h + 1),
    )

    out_t = pl.pallas_call(
        partial(rawnet_kernel, bf16_matmul=bf16_matmul),
        out_shape=jax.ShapeDtypeStruct((1, n_pad), jnp.float32),
        grid=grid,
        in_specs=[
            pl.BlockSpec((2, tile), lambda i: (0, i)),    # x tile (lane-dense)
            const(w1.shape),
            const(b1.shape),
            const(w2.shape),
            const(b2.shape),
            const(w3t.shape),
            const(b3.shape),
        ],
        out_specs=pl.BlockSpec((1, tile), lambda i: (0, i)),  # lane-dense output slab
        compiler_params=pltpu.CompilerParams(
            dimension_semantics=("parallel",),            # megacore split on v7x
            vmem_limit_bytes=32 * 1024 * 1024,            # fits v7x's 64 MiB phys
        ),
        cost_estimate=cost,
    )(xt, w1, b1, w2, b2, w3t, b3)

    return out_t[0, :n].reshape(n, 1)


def init_rawnet_params(key, num_hid):
    """PyTorch nn.Linear-style init: uniform(-1/sqrt(fan_in), 1/sqrt(fan_in)),
    weights stored PyTorch-style as (out_features, in_features)."""
    keys = jax.random.split(key, 6)

    def lin(kw, kb, fan_in, fan_out):
        bound = 1.0 / jnp.sqrt(fan_in)
        w = jax.random.uniform(kw, (fan_out, fan_in), jnp.float32, -bound, bound)
        b = jax.random.uniform(kb, (fan_out,), jnp.float32, -bound, bound)
        return w, b

    w1, b1 = lin(keys[0], keys[1], 2, num_hid)
    w2, b2 = lin(keys[2], keys[3], num_hid, num_hid)
    w3, b3 = lin(keys[4], keys[5], num_hid, 1)
    return {"w1": w1, "b1": b1, "w2": w2, "b2": b2, "w3": w3, "b3": b3}


def rawnet_reference(x, params):
    h1 = jnp.tanh(x @ params["w1"].T + params["b1"])
    h2 = jnp.tanh(h1 @ params["w2"].T + params["b2"])
    return jax.nn.sigmoid(h2 @ params["w3"].T + params["b3"])


if __name__ == "__main__":
    key = jax.random.PRNGKey(0)
    k_x, k_p = jax.random.split(key)

    num_hid = 32
    params = init_rawnet_params(k_p, num_hid)

    # Multi-step batch: 1024 lanes -> tile 512, grid (2,) so the "parallel"
    # axis has work for both v7x TensorCores.
    batch = 1024
    x = jax.random.normal(k_x, (batch, 2), jnp.float32)
    out = jax.block_until_ready(rawnet_forward(x, params))
    ref = rawnet_reference(x, params)
    assert out.shape == (batch, 1)
    assert jnp.allclose(out, ref, atol=1e-5, rtol=1e-5), "mismatch vs reference (large)"

    # Tiny ragged batch (exercises lane padding + single grid step).
    x_small = jax.random.normal(k_x, (8, 2), jnp.float32)
    out_small = jax.block_until_ready(rawnet_forward(x_small, params))
    ref_small = rawnet_reference(x_small, params)
    assert out_small.shape == (8, 1)
    assert jnp.allclose(out_small, ref_small, atol=1e-5, rtol=1e-5), "mismatch vs reference (small)"

    # Optional bf16 MXU path for lin2 (v6e/v7x perf option) -- relaxed tolerance.
    out_bf16 = jax.block_until_ready(rawnet_forward(x, params, bf16_matmul=True))
    assert jnp.allclose(out_bf16, ref, atol=5e-2, rtol=5e-2), "mismatch vs reference (bf16)"

    print("KERNEL_OK")
</pallas_src>

<mosaic_0001>
module attributes {stable_mosaic.version = 11 : i64} {
  func.func @rawnet_kernel(%arg0: i32, %arg1: memref<2x512xf32, #tpu.memory_space<vmem>>, %arg2: memref<32x2xf32, #tpu.memory_space<vmem>>, %arg3: memref<32x1xf32, #tpu.memory_space<vmem>>, %arg4: memref<32x32xf32, #tpu.memory_space<vmem>>, %arg5: memref<32x1xf32, #tpu.memory_space<vmem>>, %arg6: memref<32x1xf32, #tpu.memory_space<vmem>>, %arg7: memref<1x1xf32, #tpu.memory_space<vmem>>, %arg8: memref<1x512xf32, #tpu.memory_space<vmem>>) attributes {dimension_semantics = [#tpu.dimension_semantics<parallel>], iteration_bounds = array<i64: 2>, scalar_prefetch = 0 : i64, scratch_operands = 0 : i64, tpu.core_type = #tpu.core_type<tc>, window_params = [{transform_indices = @transform_0, window_bounds = array<i64: 2, 512>}, {pipeline_mode = #tpu.pipeline_mode<synchronous>, transform_indices = @transform_1, window_bounds = array<i64: 32, 2>}, {pipeline_mode = #tpu.pipeline_mode<synchronous>, transform_indices = @transform_2, window_bounds = array<i64: 32, 1>}, {pipeline_mode = #tpu.pipeline_mode<synchronous>, transform_indices = @transform_3, window_bounds = array<i64: 32, 32>}, {pipeline_mode = #tpu.pipeline_mode<synchronous>, transform_indices = @transform_4, window_bounds = array<i64: 32, 1>}, {pipeline_mode = #tpu.pipeline_mode<synchronous>, transform_indices = @transform_5, window_bounds = array<i64: 32, 1>}, {pipeline_mode = #tpu.pipeline_mode<synchronous>, transform_indices = @transform_6, window_bounds = array<i64: 1, 1>}, {transform_indices = @transform_7, window_bounds = array<i64: 1, 512>}]} {
    %c0 = arith.constant 0 : index
    %c0_0 = arith.constant 0 : index
    %0 = vector.load %arg1[%c0, %c0_0] : memref<2x512xf32, #tpu.memory_space<vmem>>, vector<1x512xf32>
    %c1 = arith.constant 1 : index
    %c0_1 = arith.constant 0 : index
    %1 = vector.load %arg1[%c1, %c0_1] : memref<2x512xf32, #tpu.memory_space<vmem>>, vector<1x512xf32>
    %c0_2 = arith.constant 0 : index
    %c0_3 = arith.constant 0 : index
    %2 = vector.load %arg2[%c0_2, %c0_3] : memref<32x2xf32, #tpu.memory_space<vmem>>, vector<32x1xf32>
    %3 = vector.broadcast %2 : vector<32x1xf32> to vector<32x512xf32>
    %4 = vector.broadcast %0 : vector<1x512xf32> to vector<32x512xf32>
    %5 = arith.mulf %3, %4 : vector<32x512xf32>
    %c0_4 = arith.constant 0 : index
    %c1_5 = arith.constant 1 : index
    %6 = vector.load %arg2[%c0_4, %c1_5] : memref<32x2xf32, #tpu.memory_space<vmem>>, vector<32x1xf32>
    %7 = vector.broadcast %6 : vector<32x1xf32> to vector<32x512xf32>
    %8 = vector.broadcast %1 : vector<1x512xf32> to vector<32x512xf32>
    %9 = arith.mulf %7, %8 : vector<32x512xf32>
    %10 = arith.addf %5, %9 : vector<32x512xf32>
    %c0_6 = arith.constant 0 : index
    %c0_7 = arith.constant 0 : index
    %11 = vector.load %arg3[%c0_6, %c0_7] : memref<32x1xf32, #tpu.memory_space<vmem>>, vector<32x1xf32>
    %12 = vector.broadcast %11 : vector<32x1xf32> to vector<32x512xf32>
    %13 = arith.addf %10, %12 : vector<32x512xf32>
    %14 = math.tanh %13 : vector<32x512xf32>
    %c0_8 = arith.constant 0 : index
    %c0_9 = arith.constant 0 : index
    %15 = vector.load %arg4[%c0_8, %c0_9] : memref<32x32xf32, #tpu.memory_space<vmem>>, vector<32x32xf32>
    %cst = arith.constant dense<0.000000e+00> : vector<32x512xf32>
    %16 = tpu.matmul %15, %14, %cst {dimension_numbers = #tpu.dot_dimension_numbers<[1], [0], [0], [1], [0, 0, 1, 1], [], []>} : vector<32x32xf32>, vector<32x512xf32>, vector<32x512xf32> -> vector<32x512xf32>
    %c0_10 = arith.constant 0 : index
    %c0_11 = arith.constant 0 : index
    %17 = vector.load %arg5[%c0_10, %c0_11] : memref<32x1xf32, #tpu.memory_space<vmem>>, vector<32x1xf32>
    %18 = vector.broadcast %17 : vector<32x1xf32> to vector<32x512xf32>
    %19 = arith.addf %16, %18 : vector<32x512xf32>
    %20 = math.tanh %19 : vector<32x512xf32>
    %c0_12 = arith.constant 0 : index
    %c0_13 = arith.constant 0 : index
    %21 = vector.load %arg6[%c0_12, %c0_13] : memref<32x1xf32, #tpu.memory_space<vmem>>, vector<32x1xf32>
    %22 = vector.broadcast %21 : vector<32x1xf32> to vector<32x512xf32>
    %23 = arith.mulf %22, %20 : vector<32x512xf32>
    %cst_14 = arith.constant dense<0.000000e+00> : vector<512xf32>
    %24 = vector.multi_reduction <add>, %23, %cst_14 [0] : vector<32x512xf32> to vector<512xf32>
    %25 = vector.shape_cast %24 : vector<512xf32> to vector<1x512xf32>
    %c0_15 = arith.constant 0 : index
    %c0_16 = arith.constant 0 : index
    %26 = vector.load %arg7[%c0_15, %c0_16] : memref<1x1xf32, #tpu.memory_space<vmem>>, vector<1x1xf32>
    %27 = vector.broadcast %26 : vector<1x1xf32> to vector<1x512xf32>
    %28 = arith.addf %25, %27 : vector<1x512xf32>
    %cst_17 = arith.constant 5.000000e-01 : f32
    %29 = vector.broadcast %cst_17 : f32 to vector<1x512xf32>
    %30 = arith.mulf %29, %28 : vector<1x512xf32>
    %31 = math.tanh %30 : vector<1x512xf32>
    %cst_18 = arith.constant 5.000000e-01 : f32
    %32 = vector.broadcast %cst_18 : f32 to vector<1x512xf32>
    %33 = arith.mulf %32, %31 : vector<1x512xf32>
    %cst_19 = arith.constant 5.000000e-01 : f32
    %34 = vector.broadcast %cst_19 : f32 to vector<1x512xf32>
    %35 = arith.addf %33, %34 : vector<1x512xf32>
    %c0_20 = arith.constant 0 : index
    %c0_21 = arith.constant 0 : index
    %36 = vector.load %arg8[%c0_20, %c0_21] : memref<1x512xf32, #tpu.memory_space<vmem>>, vector<1x512xf32>
    tpu.vector_store %arg8[%c0_20, %c0_21], %35 {strides = array<i32>} : memref<1x512xf32, #tpu.memory_space<vmem>>, vector<1x512xf32>,
    return
  }
  func.func @transform_0(%arg0: i32) -> (i32, i32) {
    %c0_i32 = arith.constant 0 : i32
    %c0_i32_0 = arith.constant 0 : i32
    return %c0_i32, %arg0 : i32, i32
  }
  func.func @transform_1(%arg0: i32) -> (i32, i32) {
    %c0_i32 = arith.constant 0 : i32
    %c0_i32_0 = arith.constant 0 : i32
    %c0_i32_1 = arith.constant 0 : i32
    return %c0_i32, %c0_i32_0 : i32, i32
  }
  func.func @transform_2(%arg0: i32) -> (i32, i32) {
    %c0_i32 = arith.constant 0 : i32
    %c0_i32_0 = arith.constant 0 : i32
    %c0_i32_1 = arith.constant 0 : i32
    return %c0_i32, %c0_i32_0 : i32, i32
  }
  func.func @transform_3(%arg0: i32) -> (i32, i32) {
    %c0_i32 = arith.constant 0 : i32
    %c0_i32_0 = arith.constant 0 : i32
    %c0_i32_1 = arith.constant 0 : i32
    return %c0_i32, %c0_i32_0 : i32, i32
  }
  func.func @transform_4(%arg0: i32) -> (i32, i32) {
    %c0_i32 = arith.constant 0 : i32
    %c0_i32_0 = arith.constant 0 : i32
    %c0_i32_1 = arith.constant 0 : i32
    return %c0_i32, %c0_i32_0 : i32, i32
  }
  func.func @transform_5(%arg0: i32) -> (i32, i32) {
    %c0_i32 = arith.constant 0 : i32
    %c0_i32_0 = arith.constant 0 : i32
    %c0_i32_1 = arith.constant 0 : i32
    return %c0_i32, %c0_i32_0 : i32, i32
  }
  func.func @transform_6(%arg0: i32) -> (i32, i32) {
    %c0_i32 = arith.constant 0 : i32
    %c0_i32_0 = arith.constant 0 : i32
    %c0_i32_1 = arith.constant 0 : i32
    return %c0_i32, %c0_i32_0 : i32, i32
  }
  func.func @transform_7(%arg0: i32) -> (i32, i32) {
    %c0_i32 = arith.constant 0 : i32
    %c0_i32_0 = arith.constant 0 : i32
    return %c0_i32, %arg0 : i32, i32
  }
}

</mosaic_0001>

<bundles_post_ra>
// kernel: rawnet_forward.1
= control target key start
LH: loop header
LB: loop body
LE: loop exit
PB: predicated region body
PF: predicated region fallthrough
CT: control target
= control target key end

     0   :  { %s1410_s0 = inlined_call_operand.vmem [shape: f32[2,1024], index: 0, kind: input, shape index: {}]   ;;  %s1411_s1 = inlined_call_operand.vmem [shape: f32[32,2], index: 1, kind: input, shape index: {}]   ;;  %s1412_s2 = inlined_call_operand.vmem [shape: f32[32,1], index: 2, kind: input, shape index: {}]   ;;  %s1413_s3 = inlined_call_operand.vmem [shape: f32[32,32], index: 3, kind: input, shape index: {}]   ;;  %s1414_s4 = inlined_call_operand.vmem [shape: f32[32,1], index: 4, kind: input, shape index: {}]   ;;  %s1415_s5 = inlined_call_operand.vmem [shape: f32[32,1], index: 5, kind: input, shape index: {}]   ;;  %s1416_s6 = inlined_call_operand.<no memory space> [shape: f32[1,1], index: 6, kind: input, shape index: {}]   ;;  %s1417_s7 = inlined_call_operand.hbm [shape: f32[1,1024], index: 7, kind: output, shape index: {}]  }
   0x1   :  { %v12_v0 = vstv %s1416_s6 }
   0x2   :  { %13 = vst [vmem:[#allocation2] sm:$0x1] %v12_v0 }
   0x3   :  { %14 = vsyncpa [#allocation4], 0 }
   0x4   :  { %16 = vsyncpa [#allocation4 + $0x1], 0  ;;  %s1191_s26 = smov 0   ;;  %s1193_s27 = smov 0  }
   0x5   :  { %s1195_s28 = smov 0   ;;  %s1197_s29 = smov 0  }
   0x6 LB: > { %s1212_s6 = sadd.s32 4294967295, %s1141_s29   ;;  %s920_s30 = sadd.s32 4294967294, %s1141_s29   ;;  %s1141_s29 = sphi %s1197_s29, %s1423_s29   ;;  %s1137_s28 = sphi %s1195_s28, %s1422_s28   ;;  %s1133_s27 = sphi %s1193_s27, %s1421_s27   ;;  %s1129_s26 = sphi %s1191_s26, %s1420_s26  }
   0x7   : > { %s1216_s8 = sadd.s32 1, %s1141_s29   ;;  %s181_s9 = sadd.s32 1, %s1137_s28 }
   0x8   : > { %s178_s10 = ssub.s32 %s1141_s29, %s1216_s8  ;;  %p191_p0 = scmp.ne.s32.totalorder %s1137_s28, %s1133_s27 }
   0x9   : > { %p179_p1 = scmp.eq.s32.totalorder %s178_s10, 0  ;;  %p192_p2 = scmp.eq.s32.totalorder %s1212_s6, 1 }
   0xa   : > { %p197_p3 = scmp.ne.s32.totalorder %s1133_s27, %s1129_s26  ;;  %p198_p4 = scmp.eq.s32.totalorder %s920_s30, 1 }
   0xb   : > { %s1227_s11 = scalar_select %p179_p1, %s1137_s28, %s181_s9  }
   0xc   : > { %p1229_p5 = por %p192_p2, %p191_p0  ;;  %p1233_p6 = por %p198_p4, %p197_p3 }
   0xd   : > { %p923_p7 = scmp.ge.s32.totalorder %s1141_s29, 1  ;;  %p243_p8 = scmp.lt.s32.totalorder %s1141_s29, 3 }
   0xf   : > { %p244_p9 = pnand %p923_p7, %p243_p8 }
  0x10   : > { %v287_v1 = vld [vmem:[%s1411_s1 + $0x10] sm:$0xff] (!%p244_p9)  ;;  %v285_v2 = vld [vmem:[%s1411_s1] sm:$0xff] (!%p244_p9)  ;;  %v1143_v3 = vmov (!%p244_p9), 1   ;;  %v286_v4 = vld [vmem:[%s1411_s1 + $0x8] sm:$0xff] (!%p244_p9)  ;;  %v1144_v5 = vmov (!%p244_p9), 0   ;;  %v1145_v20 = vmov (!%p244_p9), 0.0   ;;  %v310_v21 = vlaneseq (!%p244_p9) }
  0x11   : > { %247 = sbr.rel (%p244_p9) target bundleno = 492 (0x1ec), region = 48  ;;  %1003 = vset.pattern.permute.xlu0 (!%p244_p9), %v1143_v3  ;;  %1001 = vset.pattern.permute.xlu1 (!%p244_p9), %v1143_v3  ;;  %v288_v6 = vld [vmem:[%s1411_s1 + $0x18] sm:$0xff] (!%p244_p9)  ;;  %v416_v7 = vld [vmem:[%s1412_s2 + $0x8] sm:$0xff] (!%p244_p9)  ;;  %v415_v8 = vld [vmem:[%s1412_s2] sm:$0xff] (!%p244_p9)  ;;  %s925_s16 = sshll.u32 (!%p244_p9), %s1212_s6, 2  ;;  %vm499_vm0 = vcmask (!%p244_p9), 261120  }
  0x12   : > { %355 = vperm.xlu0 (!%p244_p9), %1003, %v287_v1   ;;  %347 = vperm.xlu1 (!%p244_p9), %1001, %v285_v2   ;;  %v475_v9 = vld [vmem:[%s1414_s4] sm:$0xff] (!%p244_p9)  ;;  %v417_v10 = vld [vmem:[%s1412_s2 + $0x10] sm:$0xff] (!%p244_p9)  ;;  %v418_v12 = vld [vmem:[%s1412_s2 + $0x18] sm:$0xff] (!%p244_p9)  ;;  %p276_p10 = scmp.lt.s32.totalorder (!%p244_p9), %s925_s16, 7  ;;  %v1291_v22 = vshrl.u32 (!%p244_p9), %v310_v21, 7  ;;  %s272_s14 = sand.u32 (!%p244_p9), 1, %s1133_s27  }
  0x13   : > { %v477_v11 = vld [vmem:[%s1414_s4 + $0x10] sm:$0xff] (!%p244_p9)  ;;  %v706_v13 = vld [vmem:[%s1415_s5] sm:$0xff] (!%p244_p9)  ;;  %v476_v14 = vld [vmem:[%s1414_s4 + $0x8] sm:$0xff] (!%p244_p9)  ;;  %576 = vmatprep.mubr.f32.mxu0 (!%p244_p9), %v1145_v20  ;;  %665 = vmatprep.mubr.f32.mxu1 (!%p244_p9), %v1145_v20  ;;  %s924_s15 = sshll.u32 (!%p244_p9), %s272_s14, 2  ;;  %vm843_vm1 = vcmp.lt.s32.totalorder (!%p244_p9), %v310_v21, 512  ;;  %s847_s22 = scalar_lea.sflag (!%p244_p9), [#allocation4], %s272_s14 }
  0x14   : > { %v708_v15 = vld [vmem:[%s1415_s5 + $0x10] sm:$0xff] (!%p244_p9)  ;;  %v478_v16 = vld [vmem:[%s1414_s4 + $0x18] sm:$0xff] (!%p244_p9)  ;;  %v782_v17 = vld [vmem:[#allocation2] sm:$0x1] (!%p244_p9)  ;;  %v1297_v25 = vsub.s32 (!%p244_p9), 0, %v1291_v22  ;;  %v316_v26 = vsub.s32 (!%p244_p9), 1, %v1291_v22 }
  0x15   : > { %v707_v18 = vld [vmem:[%s1415_s5 + $0x8] sm:$0xff] (!%p244_p9)  ;;  %v709_v19 = vld [vmem:[%s1415_s5 + $0x18] sm:$0xff] (!%p244_p9)  ;;  %v320_v27 = vsub.s32 (!%p244_p9), 2, %v1291_v22  ;;  %v324_v30 = vsub.s32 (!%p244_p9), 3, %v1291_v22 }
  0x16   : > { %1004 = vset.pattern.permute.xlu0 (!%p244_p9), %v1144_v5  ;;  %351 = vperm.xlu1 (!%p244_p9), %1001, %v286_v4  }
  0x17   : > { %291 = vperm.xlu0 (!%p244_p9), %1004, %v285_v2  }
  0x18   : > { %s1425_s16 = smov (!%p276_p10, %s925_s16), 7 }
  0x19   : > { %s926_s17 = sshll.u32 %s1425_s16, 1  ;;  %s941_s16 = sshll.u32 %s1212_s6, 6 }
  0x1a   : > { %1002 = vset.pattern.permute.xlu1 %v1144_v5  ;;  %s279_s20 = scalar_lea.vmem %s1410_s0, %s926_s17  ;;  %s274_s17 = scalar_lea.vmem [#allocation3], %s924_s15 }
  0x1b   : > { %296 = vperm.xlu0 %1004, %v286_v4   ;;  %306 = vperm.xlu1 %1002, %v288_v6   ;;  %v927_v28 = vld [vmem:[%s279_s20 + $0x1] ss:$2 sm:$0xf]  ;;  %v282_v32 = vld [vmem:[%s279_s20] ss:$2 sm:$0xf]  ;;  %s1368_s21 = scalar_lea.hbm %s1417_s7, %s941_s16 }
  0x1c   : > { %v366_v33 = vrot.slane %v927_v28, %v1297_v25  ;;  %v370_v34 = vrot.slane %v927_v28, %v316_v26  ;;  %v1303_v35 = vrot.slane %v927_v28, %v320_v27  ;;  %v1305_v36 = vrot.slane %v927_v28, %v324_v30  ;;  %s861_s18 = sshll.u32 %s274_s17, 4  ;;  %s1147_s6 = smov [#allocation3]   ;;  %s1370_s18 = int_to_ptr.vmem [resolvable:$true] %s861_s18 }
  0x1d   : > { %v313_v37 = vrot.slane %v282_v32, %v1297_v25  ;;  %v317_v38 = vrot.slane %v282_v32, %v316_v26  ;;  %v1310_v41 = vrot.slane %v282_v32, %v320_v27  ;;  %v1312_v44 = vrot.slane %v282_v32, %v324_v30  ;;  %s1079_s23 = scalar_lea.vmem %s1370_s18, 64  ;;  %s1083_s24 = sshll.u32 %s1147_s6, 4  ;;  %s1084_s24 = int_to_ptr.vmem [resolvable:$false] %s1083_s24 }
  0x1e   : > { %p1080_p11 = scmp.ne.s32.totalorder %s1370_s18, %s1079_s23  ;;  %s1085_s25 = scalar_lea.vmem %s1084_s24, 128 }
  0x1f   : > { %301 = vperm.xlu0 %1004, %v287_v1   ;;  %1005 = vset.pattern.permute.xlu1 %v1143_v3  ;;  %p1086_p0 = scmp.lt.s32.totalorder %s1370_s18, %s1084_s24  ;;  %p1087_p1 = scmp.lt.s32.totalorder %s1085_s25, %s1079_s23 }
  0x20   : > { %359 = vperm.xlu1 %1005, %v288_v6   ;;  %p1081_p12 = pnand %p1080_p11, %p1229_p5 }
  0x21   : > { %p1088_p2 = por %p1087_p1, %p1086_p0 }
  0x22   : > { %p1082_p13 = pneg %p1081_p12 }
  0x23   : > { %426 = vperm.xlu0 %1004, %v416_v7  }
  0x24   : > { %1006 = vset.pattern.permute.xlu1 %v1144_v5  ;;  %p1089_p3 = pnand %p1088_p2, %p1082_p13 }
  0x25   : > { %421 = vperm.xlu1 %1006, %v415_v8  }
  0x27   : > { %481 = vperm.xlu0 %1004, %v475_v9  }
  0x29   : > { %431 = vperm.xlu1 %1006, %v417_v10  }
  0x2b   : > { %491 = vperm.xlu0 %1004, %v477_v11  }
  0x2d   : > { %436 = vperm.xlu1 %1006, %v418_v12  }
  0x2f   : > { %712 = vperm.xlu0 %1004, %v706_v13  }
  0x31   : > { %486 = vperm.xlu1 %1006, %v476_v14  }
  0x33   : > { %722 = vperm.xlu0 %1004, %v708_v15  }
  0x35   : > { %496 = vperm.xlu1 %1006, %v478_v16  }
  0x37   : > { %785 = vperm.xlu0 %1004, %v782_v17  }
  0x39   : > { %717 = vperm.xlu1 %1006, %v707_v18  }
  0x3d   : > { %727 = vperm.xlu1 %1006, %v709_v19  }
  0x91   : > { %v348_v23 = vpop.permute.xlu1 %347  ;;  %v356_v24 = vpop.permute.xlu0 %355 }
  0x92   : > { %v383_v42 = vmul.f32 %v366_v33, %v348_v23  ;;  %v384_v43 = vmul.f32 %v370_v34, %v348_v23  ;;  %v385_v45 = vmul.f32 %v1303_v35, %v348_v23  ;;  %v386_v49 = vmul.f32 %v1305_v36, %v348_v23 }
  0x93   : > { %v391_v54 = vmul.f32 %v366_v33, %v356_v24  ;;  %v392_v59 = vmul.f32 %v370_v34, %v356_v24  ;;  %v393_v63 = vmul.f32 %v1303_v35, %v356_v24  ;;  %v394_v3 = vmul.f32 %v1305_v36, %v356_v24 }
  0x95   : > { %v352_v29 = vpop.permute.xlu1 %351 }
  0x96   : > { %v292_v31 = vpop.permute.xlu0 %291  ;;  %v387_v55 = vmul.f32 %v366_v33, %v352_v29  ;;  %v388_v56 = vmul.f32 %v370_v34, %v352_v29  ;;  %v389_v57 = vmul.f32 %v1303_v35, %v352_v29  ;;  %v390_v60 = vmul.f32 %v1305_v36, %v352_v29 }
  0x97   : > { %v330_v50 = vmul.f32 %v313_v37, %v292_v31  ;;  %v331_v51 = vmul.f32 %v317_v38, %v292_v31  ;;  %v332_v61 = vmul.f32 %v1310_v41, %v292_v31  ;;  %v333_v62 = vmul.f32 %v1312_v44, %v292_v31 }
  0x99   : > { %v399_v6 = vadd.f32 %v383_v42, %v330_v50  ;;  %v400_v7 = vadd.f32 %v384_v43, %v331_v51  ;;  %v401_v15 = vadd.f32 %v385_v45, %v332_v61  ;;  %v402_v16 = vadd.f32 %v386_v49, %v333_v62 }
  0x9a   : > { %v297_v39 = vpop.permute.xlu0 %296  ;;  %v1308_v40 = vpop.permute.xlu1 %306 }
  0x9b   : > { %v334_v46 = vmul.f32 %v313_v37, %v297_v39  ;;  %v335_v47 = vmul.f32 %v317_v38, %v297_v39  ;;  %v336_v48 = vmul.f32 %v1310_v41, %v297_v39  ;;  %v337_v52 = vmul.f32 %v1312_v44, %v297_v39 }
  0x9c   : > { %v342_v17 = vmul.f32 %v313_v37, %v1308_v40  ;;  %v343_v23 = vmul.f32 %v317_v38, %v1308_v40 }
  0x9d   : > { %v403_v0 = vadd.f32 %v387_v55, %v334_v46  ;;  %v404_v1 = vadd.f32 %v388_v56, %v335_v47  ;;  %v405_v2 = vadd.f32 %v389_v57, %v336_v48  ;;  %v406_v5 = vadd.f32 %v390_v60, %v337_v52 }
  0x9e   : > { %v302_v53 = vpop.permute.xlu0 %301  ;;  %v345_v48 = vmul.f32 %v1312_v44, %v1308_v40 }
  0x9f   : > { %v360_v58 = vpop.permute.xlu1 %359  ;;  %v338_v8 = vmul.f32 %v313_v37, %v302_v53  ;;  %v339_v12 = vmul.f32 %v317_v38, %v302_v53  ;;  %v340_v18 = vmul.f32 %v1310_v41, %v302_v53  ;;  %v341_v24 = vmul.f32 %v1312_v44, %v302_v53 }
  0xa0   : > { %v395_v27 = vmul.f32 %v366_v33, %v360_v58  ;;  %v396_v30 = vmul.f32 %v370_v34, %v360_v58  ;;  %v397_v37 = vmul.f32 %v1303_v35, %v360_v58  ;;  %v398_v38 = vmul.f32 %v1305_v36, %v360_v58 }
  0xa1   : > { %v407_v29 = vadd.f32 %v391_v54, %v338_v8  ;;  %v408_v39 = vadd.f32 %v392_v59, %v339_v12  ;;  %v409_v42 = vadd.f32 %v393_v63, %v340_v18  ;;  %v410_v45 = vadd.f32 %v394_v3, %v341_v24 }
  0xa2   : > { %v427_v4 = vpop.permute.xlu0 %426  ;;  %v344_v33 = vmul.f32 %v1310_v41, %v1308_v40  ;;  %v411_v34 = vadd.f32 %v395_v27, %v342_v17  ;;  %v412_v50 = vadd.f32 %v396_v30, %v343_v23  ;;  %v414_v36 = vadd.f32 %v398_v38, %v345_v48 }
  0xa3   : > { %v443_v9 = vadd.f32 %v427_v4, %v403_v0  ;;  %v444_v10 = vadd.f32 %v427_v4, %v404_v1  ;;  %v445_v11 = vadd.f32 %v427_v4, %v405_v2  ;;  %v446_v13 = vadd.f32 %v427_v4, %v406_v5 }
  0xa4   : > { %v422_v14 = vpop.permute.xlu1 %421  ;;  %v413_v51 = vadd.f32 %v397_v37, %v344_v33 }
  0xa5   : > { %1007 = vtanh.f32 %v443_v9  ;;  %v439_v19 = vadd.f32 %v422_v14, %v399_v6  ;;  %v440_v26 = vadd.f32 %v422_v14, %v400_v7  ;;  %v441_v28 = vadd.f32 %v422_v14, %v401_v15  ;;  %v473_v15 = vld [vmem:[%s1413_s3 + $0x10] sm:$0xff] }
  0xa6   : > { %1009 = vtanh.f32 %v444_v10  ;;  %v442_v31 = vadd.f32 %v422_v14, %v402_v16  ;;  %v472_v14 = vld [vmem:[%s1413_s3 + $0x8] sm:$0xff]  ;;  %v474_v16 = vld [vmem:[%s1413_s3 + $0x18] sm:$0xff]  ;;  %v482_v17 = vpop.permute.xlu0 %481 }
  0xa7   : > { %1011 = vtanh.f32 %v445_v11 }
  0xa8   : > { %1013 = vtanh.f32 %v446_v13  ;;  %v432_v32 = vpop.permute.xlu1 %431  ;;  %v471_v13 = vld [vmem:[%s1413_s3] sm:$0xff] }
  0xa9   : > { %1015 = vtanh.f32 %v439_v19  ;;  %v447_v43 = vadd.f32 %v432_v32, %v407_v29  ;;  %v448_v46 = vadd.f32 %v432_v32, %v408_v39  ;;  %v449_v47 = vadd.f32 %v432_v32, %v409_v42 }
  0xaa   : > { %1017 = vtanh.f32 %v440_v26  ;;  %v450_v49 = vadd.f32 %v432_v32, %v410_v45  ;;  %v492_v38 = vpop.permute.xlu0 %491 }
  0xab   : > { %1019 = vtanh.f32 %v441_v28 }
  0xac   : > { %1021 = vtanh.f32 %v442_v31  ;;  %v437_v35 = vpop.permute.xlu1 %436 }
  0xad   : > { %1023 = vtanh.f32 %v447_v43  ;;  %v451_v52 = vadd.f32 %v437_v35, %v411_v34  ;;  %v452_v53 = vadd.f32 %v437_v35, %v412_v50  ;;  %v453_v55 = vadd.f32 %v437_v35, %v413_v51 }
  0xae   : > { %1025 = vtanh.f32 %v448_v46  ;;  %v454_v56 = vadd.f32 %v437_v35, %v414_v36 }
  0xaf   : > { %v1008_v54 = vpop.eup %1007  ;;  %1027 = vtanh.f32 %v449_v47 }
  0xb0   : > { %v1010_v41 = vpop.eup %1009  ;;  %1029 = vtanh.f32 %v450_v49  ;;  %v487_v29 = vpop.permute.xlu1 %486 }
  0xb1   : > { %v1012_v57 = vpop.eup %1011  ;;  %1031 = vtanh.f32 %v451_v52 }
  0xb2   : > { %v1014_v58 = vpop.eup %1013  ;;  %1033 = vtanh.f32 %v452_v53 }
  0xb3   : > { %v1016_v40 = vpop.eup %1015  ;;  %1035 = vtanh.f32 %v453_v55 }
  0xb4   : > { %v1018_v44 = vpop.eup %1017  ;;  %1037 = vtanh.f32 %v454_v56  ;;  %v944_v59 = vpack.c.bf16 %v1008_v54, %v1016_v40  ;;  %v497_v49 = vpop.permute.xlu1 %496 }
  0xb5   : > { %v1020_v60 = vpop.eup %1019  ;;  %v942_v61 = vpack.c.bf16 %v1010_v41, %v1018_v44 }
  0xb6   : > { %v1022_v62 = vpop.eup %1021  ;;  %v952_v63 = vpack.c.bf16 %v1012_v57, %v1020_v60 }
  0xb7   : > { %v1024_v0 = vpop.eup %1023  ;;  %943 = vmatprep.subr.bf16.mxu0 %v942_v61  ;;  %v950_v1 = vpack.c.bf16 %v1014_v58, %v1022_v62  ;;  %v713_v58 = vpop.permute.xlu0 %712 }
  0xb8   : > { %v1026_v2 = vpop.eup %1025  ;;  %945 = vmatpush1.bf16.msra.mxu0 %v944_v59  ;;  %v718_v62 = vpop.permute.xlu1 %717 }
  0xb9   : > { %v1028_v3 = vpop.eup %1027  ;;  %951 = vmatprep.subr.bf16.mxu1 %v950_v1 }
  0xba   : > { %v1030_v4 = vpop.eup %1029  ;;  %953 = vmatpush1.bf16.msra.mxu1 %v952_v63 }
  0xbb   : > { %v1032_v5 = vpop.eup %1031 }
  0xbc   : > { %v1034_v6 = vpop.eup %1033  ;;  %v948_v7 = vpack.c.bf16 %v1032_v5, %v1024_v0 }
  0xbd   : > { %v1036_v8 = vpop.eup %1035  ;;  %v946_v9 = vpack.c.bf16 %v1034_v6, %v1026_v2 }
  0xbe   : > { %v1038_v10 = vpop.eup %1037  ;;  %v956_v11 = vpack.c.bf16 %v1036_v8, %v1028_v3 }
  0xbf   : > { %947 = vmatprep.subr.bf16.mxu0 %v946_v9  ;;  %v954_v12 = vpack.c.bf16 %v1038_v10, %v1030_v4  ;;  %v723_v10 = vpop.permute.xlu0 %722 }
  0xc0   : > { %949 = vmatpush1.bf16.msra.mxu0 %v948_v7 }
  0xc1   : > { %955 = vmatprep.subr.bf16.mxu1 %v954_v12 }
  0xc2   : > { %957 = vmatpush1.bf16.msra.mxu1 %v956_v11 }
  0xc3   : > { %928 = vmatmul.mubr.msk.f32.vlgmr.msra.gmra.mrb[0].mxu0 %vm499_vm0, %v471_v13 }
  0xc4   : > { %582 = vmatprep.mubr.f32.mxu0 %v1145_v20 }
  0xc5   : > { %932 = vmatmul.mubr.msk.f32.vlgmr.msra.gmra.mrb[0].mxu1 %vm499_vm0, %v471_v13 }
  0xc6   : > { %671 = vmatprep.mubr.f32.mxu1 %v1145_v20 }
  0xc7   : > { %929 = vmatmul.mubr.msk.f32.gmra.mrb[2].mxu0 %vm499_vm0, %v472_v14 }
  0xc8   : > { %588 = vmatprep.mubr.f32.mxu0 %v1145_v20 }
  0xc9   : > { %933 = vmatmul.mubr.msk.f32.gmra.mrb[2].mxu1 %vm499_vm0, %v472_v14 }
  0xca   : > { %677 = vmatprep.mubr.f32.mxu1 %v1145_v20 }
  0xcb   : > { %930 = vmatmul.mubr.msk.f32.gmra.mrb[4].mxu0 %vm499_vm0, %v473_v15 }
  0xcc   : > { %594 = vmatprep.mubr.f32.mxu0 %v1145_v20 }
  0xcd   : > { %934 = vmatmul.mubr.msk.f32.gmra.mrb[4].mxu1 %vm499_vm0, %v473_v15 }
  0xce   : > { %683 = vmatprep.mubr.f32.mxu1 %v1145_v20 }
  0xcf   : > { %931 = vmatmul.mubr.msk.f32.gmra.mrb[6].mxu0 %vm499_vm0, %v474_v16 }
  0xd1   : > { %935 = vmatmul.mubr.msk.f32.gmra.mrb[6].mxu1 %vm499_vm0, %v474_v16 }
 0x196   : > { %v578_v18 = vpop.f32.mrb[0].mxu0 }
 0x197   : > { %v579_v19 = vadd.f32 %v578_v18, %v482_v17  ;;  %v580_v23 = vpop.f32.mrb[1].mxu0 }
 0x198   : > { %v667_v24 = vpop.f32.mrb[0].mxu1  ;;  %v581_v26 = vadd.f32 %v580_v23, %v482_v17 }
 0x199   : > { %1039 = vtanh.f32 %v579_v19  ;;  %v668_v27 = vadd.f32 %v667_v24, %v482_v17  ;;  %v669_v28 = vpop.f32.mrb[1].mxu1 }
 0x19a   : > { %1041 = vtanh.f32 %v581_v26  ;;  %v670_v30 = vadd.f32 %v669_v28, %v482_v17  ;;  %v584_v31 = vpop.f32.mrb[2].mxu0  ;;  %v728_v28 = vpop.permute.xlu1 %727 }
 0x19b   : > { %1043 = vtanh.f32 %v668_v27  ;;  %v585_v32 = vadd.f32 %v584_v31, %v487_v29  ;;  %v586_v20 = vpop.f32.mrb[3].mxu0 }
 0x19c   : > { %1045 = vtanh.f32 %v670_v30  ;;  %v673_v39 = vpop.f32.mrb[2].mxu1  ;;  %v587_v37 = vadd.f32 %v586_v20, %v487_v29 }
 0x19d   : > { %1047 = vtanh.f32 %v585_v32  ;;  %v674_v42 = vadd.f32 %v673_v39, %v487_v29  ;;  %v675_v43 = vpop.f32.mrb[3].mxu1 }
 0x19e   : > { %1049 = vtanh.f32 %v587_v37  ;;  %v676_v45 = vadd.f32 %v675_v43, %v487_v29  ;;  %v590_v46 = vpop.f32.mrb[4].mxu0 }
 0x19f   : > { %1051 = vtanh.f32 %v674_v42  ;;  %v591_v33 = vadd.f32 %v590_v46, %v492_v38  ;;  %v592_v47 = vpop.f32.mrb[5].mxu0 }
 0x1a0   : > { %1053 = vtanh.f32 %v676_v45  ;;  %v679_v34 = vpop.f32.mrb[4].mxu1  ;;  %v593_v48 = vadd.f32 %v592_v47, %v492_v38 }
 0x1a1   : > { %1055 = vtanh.f32 %v591_v33  ;;  %v680_v35 = vadd.f32 %v679_v34, %v492_v38  ;;  %v681_v50 = vpop.f32.mrb[5].mxu1 }
 0x1a2   : > { %1057 = vtanh.f32 %v593_v48  ;;  %v682_v51 = vadd.f32 %v681_v50, %v492_v38  ;;  %v596_v52 = vpop.f32.mrb[6].mxu0 }
 0x1a3   : > { %v1040_v36 = vpop.eup %1039  ;;  %1059 = vtanh.f32 %v680_v35  ;;  %v597_v53 = vadd.f32 %v596_v52, %v497_v49  ;;  %v598_v54 = vpop.f32.mrb[7].mxu0 }
 0x1a4   : > { %v1042_v55 = vpop.eup %1041  ;;  %1061 = vtanh.f32 %v682_v51  ;;  %v685_v41 = vpop.f32.mrb[6].mxu1  ;;  %v599_v56 = vadd.f32 %v598_v54, %v497_v49  ;;  %v730_v0 = vmul.f32 %v1040_v36, %v713_v58 }
 0x1a5   : > { %v1044_v57 = vpop.eup %1043  ;;  %1063 = vtanh.f32 %v597_v53  ;;  %v686_v40 = vadd.f32 %v685_v41, %v497_v49  ;;  %v687_v44 = vpop.f32.mrb[7].mxu1  ;;  %v731_v3 = vmul.f32 %v1042_v55, %v713_v58 }
 0x1a6   : > { %v1046_v59 = vpop.eup %1045  ;;  %1065 = vtanh.f32 %v599_v56  ;;  %v688_v60 = vadd.f32 %v687_v44, %v497_v49  ;;  %v732_v6 = vmul.f32 %v1044_v57, %v713_v58  ;;  %v786_v57 = vpop.permute.xlu0 %785 }
 0x1a7   : > { %v1048_v61 = vpop.eup %1047  ;;  %1067 = vtanh.f32 %v686_v40  ;;  %v733_v11 = vmul.f32 %v1046_v59, %v713_v58 }
 0x1a8   : > { %v1050_v63 = vpop.eup %1049  ;;  %v734_v1 = vmul.f32 %v1048_v61, %v718_v62  ;;  %1069 = vtanh.f32 %v688_v60 }
 0x1a9   : > { %v1052_v2 = vpop.eup %1051  ;;  %v735_v4 = vmul.f32 %v1050_v63, %v718_v62 }
 0x1aa   : > { %v1054_v5 = vpop.eup %1053  ;;  %v746_v7 = vadd.f32 %v734_v1, %v730_v0  ;;  %v736_v8 = vmul.f32 %v1052_v2, %v718_v62 }
 0x1ab   : > { %v1056_v9 = vpop.eup %1055  ;;  %v755_v12 = vadd.f32 %v735_v4, %v731_v3  ;;  %v737_v13 = vmul.f32 %v1054_v5, %v718_v62  ;;  %v791_v62 = vrot.slane %v786_v57, %v1297_v25  ;;  %v1146_v25 = vmov 1966171168  }
 0x1ac   : > { %v1058_v14 = vpop.eup %1057  ;;  %v764_v15 = vadd.f32 %v736_v8, %v732_v6  ;;  %v738_v16 = vmul.f32 %v1056_v9, %v723_v10 }
 0x1ad   : > { %v1060_v17 = vpop.eup %1059  ;;  %v773_v18 = vadd.f32 %v737_v13, %v733_v11  ;;  %v739_v19 = vmul.f32 %v1058_v14, %v723_v10  ;;  %v819_v13 = vunpack.c.l.s4 %v1146_v25 }
 0x1ae   : > { %v1062_v23 = vpop.eup %1061  ;;  %v747_v24 = vadd.f32 %v746_v7, %v738_v16  ;;  %v740_v26 = vmul.f32 %v1060_v17, %v723_v10 }
 0x1af   : > { %v1064_v27 = vpop.eup %1063  ;;  %v756_v29 = vadd.f32 %v755_v12, %v739_v19  ;;  %v741_v30 = vmul.f32 %v1062_v23, %v723_v10 }
 0x1b0   : > { %v1066_v31 = vpop.eup %1065  ;;  %v765_v32 = vadd.f32 %v764_v15, %v740_v26  ;;  %v742_v20 = vmul.f32 %v1064_v27, %v728_v28  ;;  %v820_v15 = vunpack.c.0.s8 %v819_v13 }
 0x1b1   : > { %v1068_v39 = vpop.eup %1067  ;;  %v774_v37 = vadd.f32 %v773_v18, %v741_v30  ;;  %v743_v42 = vmul.f32 %v1066_v31, %v728_v28 }
 0x1b2   : > { %v1070_v43 = vpop.eup %1069  ;;  %v748_v38 = vadd.f32 %v747_v24, %v742_v20  ;;  %v744_v45 = vmul.f32 %v1068_v39, %v728_v28 }
 0x1b3   : > { %v757_v46 = vadd.f32 %v756_v29, %v743_v42  ;;  %v745_v33 = vmul.f32 %v1070_v43, %v728_v28  ;;  %v823_v29 = vsub.s32 %v820_v15, %v1291_v22 }
 0x1b4   : > { %v749_v47 = vrot.slane %v748_v38, 4  ;;  %v766_v34 = vadd.f32 %v765_v32, %v744_v45 }
 0x1b5   : > { %v758_v48 = vrot.slane %v757_v46, 4  ;;  %v775_v49 = vadd.f32 %v774_v37, %v745_v33 }
 0x1b6   : > { %v750_v35 = vadd.f32 %v749_v47, %v748_v38  ;;  %v767_v50 = vrot.slane %v766_v34, 4 }
 0x1b7   : > { %v759_v51 = vadd.f32 %v758_v48, %v757_v46  ;;  %v776_v52 = vrot.slane %v775_v49, 4 }
 0x1b8   : > { %v751_v36 = vrot.slane %v750_v35, 2  ;;  %v768_v53 = vadd.f32 %v767_v50, %v766_v34 }
 0x1b9   : > { %v760_v54 = vrot.slane %v759_v51, 2  ;;  %v777_v55 = vadd.f32 %v776_v52, %v775_v49 }
 0x1ba   : > { %v752_v41 = vadd.f32 %v751_v36, %v750_v35  ;;  %v769_v56 = vrot.slane %v768_v53, 2 }
 0x1bb   : > { %v761_v58 = vadd.f32 %v760_v54, %v759_v51  ;;  %v778_v40 = vrot.slane %v777_v55, 2 }
 0x1bc   : > { %v753_v44 = vrot.slane %v752_v41, 1  ;;  %v770_v59 = vadd.f32 %v769_v56, %v768_v53 }
 0x1bd   : > { %v762_v60 = vrot.slane %v761_v58, 1  ;;  %v779_v61 = vadd.f32 %v778_v40, %v777_v55 }
 0x1be   : > { %v754_v63 = vadd.f32 %v753_v44, %v752_v41  ;;  %v771_v0 = vrot.slane %v770_v59, 1 }
 0x1bf   : > { %v763_v1 = vadd.f32 %v762_v60, %v761_v58  ;;  %v780_v2 = vrot.slane %v779_v61, 1 }
 0x1c0   : > { %v772_v3 = vadd.f32 %v771_v0, %v770_v59  ;;  %v792_v4 = vadd.f32 %v791_v62, %v754_v63 }
 0x1c1   : > { %v781_v5 = vadd.f32 %v780_v2, %v779_v61  ;;  %v793_v6 = vadd.f32 %v791_v62, %v763_v1 }
 0x1c2   : > { %v794_v7 = vadd.f32 %v791_v62, %v772_v3  ;;  %v796_v8 = vmul.f32 0.5, %v792_v4 }
 0x1c3   : > { %v795_v9 = vadd.f32 %v791_v62, %v781_v5  ;;  %v797_v10 = vmul.f32 0.5, %v793_v6 }
 0x1c4   : > { %v798_v11 = vmul.f32 0.5, %v794_v7  ;;  %1071 = vtanh.f32 %v796_v8 }
 0x1c5   : > { %v799_v12 = vmul.f32 0.5, %v795_v9  ;;  %1073 = vtanh.f32 %v797_v10 }
 0x1c6   : > { %1075 = vtanh.f32 %v798_v11 }
 0x1c7   : > { %1077 = vtanh.f32 %v799_v12 }
 0x1ce   : > { %v1072_v14 = vpop.eup %1071 }
 0x1cf   : > { %v1074_v16 = vpop.eup %1073  ;;  %v804_v17 = vmul.f32 0.5, %v1072_v14 }
 0x1d0   : > { %v1076_v18 = vpop.eup %1075  ;;  %v805_v19 = vmul.f32 0.5, %v1074_v16 }
 0x1d1   : > { %v1078_v23 = vpop.eup %1077  ;;  %v806_v24 = vmul.f32 0.5, %v1076_v18  ;;  %v808_v26 = vadd.f32 0.5, %v804_v17 }
 0x1d2   : > { %v807_v27 = vmul.f32 0.5, %v1078_v23  ;;  %v809_v28 = vadd.f32 0.5, %v805_v19 }
 0x1d3   : > { %v810_v30 = vadd.f32 0.5, %v806_v24 }
 0x1d4   : > { %v811_v31 = vadd.f32 0.5, %v807_v27  ;;  %v816_v32 = vcombine.low %v808_v26, %v809_v28 }
 0x1d6   : > { %v817_v20 = vcombine.low %v810_v30, %v811_v31  ;;  %v824_v39 = vrot.slane %v816_v32, %v823_v29 }
 0x1d8   : > { %v831_v37 = vrot.slane %v817_v20, %v823_v29 }
 0x1da   : > { %v832_v42 = vcombine.low %v824_v39, %v831_v37 }
 0x1dc   : > { %v839_v43 = vrot.slane %v832_v42, %v823_v29 }
 0x1de   : > { %845 = vst.msk [vmem:[%s274_s17] sm:$0xf] %vm843_vm1, %v839_v43 }
 0x1df   : > { %1092 = shalt.err (!%p1089_p3)
}
 0x1e0   : > { %s1093_s30 = scalar_lea.hbm %s1368_s21, 64  ;;  %s1097_s14 = scalar_lea.hbm %s1417_s7, 128 }
 0x1e1   : > { %p1094_p4 = scmp.ne.s32.totalorder %s1368_s21, %s1093_s30  ;;  %p1098_p9 = scmp.lt.u32.totalorder %s1368_s21, %s1417_s7 }
 0x1e2   : > { %p1099_p10 = scmp.lt.u32.totalorder %s1097_s14, %s1093_s30  ;;  %p1101_p12 = scmp.lt.u32.totalorder %s1093_s30, %s1368_s21 }
 0x1e3   : > { %p1095_p7 = pnand %p1094_p4, %p1229_p5 }
 0x1e4   : > { %p1100_p11 = por %p1099_p10, %p1098_p9 }
 0x1e5   : > { %p1096_p8 = pneg %p1095_p7 }
 0x1e6   : > { %p1102_p13 = por %p1101_p12, %p1100_p11 }
 0x1e8   : > { %p1103_p0 = pnand %p1102_p13, %p1096_p8 }
 0x1ea   : > { %1106 = shalt.err (!%p1103_p0)
}
 0x1eb   : > { %958 = dma.vmem_to_hbm [thread:$0]  (%p1229_p5), %s1370_s18, 64, %s1368_s21, %s847_s22  }
 0x1ec PF: > { %p964_p1 = scmp.ge.s32.totalorder %s1141_s29, 2  ;;  %s873_s17 = sand.u32 1, %s1129_s26  }
 0x1ed   : > { %s874_s19 = scalar_lea.sflag [#allocation4], %s873_s17 }
 0x1ee   : > { %p961_p2 = pnand %p964_p1, %p1233_p6 }
 0x1f0   : > { %1124 = dma.done.wait (!%p961_p2), %s874_s19, 64  }
 0x1f1   : > { %1126 = vsyncadd (!%p961_p2), %s874_s19, 4294967232  ;;  %p19_p3 = scmp.ge.s32.totalorder %s1216_s8, 4   ;;  %s1420_s26 = smov %s1133_s27 }
 0x1f2   : > { %s1421_s27 = smov %s1137_s28  ;;  %s1422_s28 = smov %s1227_s11 }
 0x1f3   : > { %s1423_s29 = smov %s1216_s8  ;;  %21 = sbr.rel (!%p19_p3) target bundleno = 6 (0x6), region = 84 }
 0x1fa   :  { %879 = vsyncpa [#allocation4], 1 }
 0x1fb   :  { %881 = vsyncpa [#allocation4 + $0x1], 1 }

</bundles_post_ra>
